<compile_context>
chip_gen: v7x
topology: tpu7x:2x2x1
jax: 0.10.0
libtpu: 0.0.40
codegen_flags: <defaults>
</compile_context>

<pallas_src>
import math
from functools import partial

import jax
import jax.numpy as jnp
from jax.experimental import pallas as pl
from jax.experimental.pallas import tpu as pltpu

_LANE = 128
_ROW = 16          # token-tile sublane alignment (covers f32 and bf16 packing)


def _round_up(a, b):
    return (a + b - 1) // b * b


def _pad2d(a, rows, cols):
    pr, pc = rows - a.shape[0], cols - a.shape[1]
    if pr == 0 and pc == 0:
        return a
    return jnp.pad(a, ((0, pr), (0, pc)))


def _vmem_capacity_bytes():
    try:
        return int(pltpu.get_tpu_info().vmem_capacity_bytes)
    except Exception:
        return 64 * 1024 * 1024          # conservative: v7x per-TensorCore


def _vmem_budget_bytes(cap):
    # working-set target, leaving room for Mosaic internal scratch / spills
    if cap <= 80 * 1024 * 1024:          # v7x: 64 MiB / TC
        return 36 * 1024 * 1024
    return 96 * 1024 * 1024              # v5e / v6e: 128 MiB


# --------------------------------------------------------------------------
# Kernel
# --------------------------------------------------------------------------
def _mlp_kernel(x_ref, w1_ref, b1_ref, w2_ref, b2_ref, o_ref, acc_ref,
                *, approximate_gelu, compute_dtype):
    # x_ref : (TM, C_in)      token tile (input dtype, cast in-kernel)
    # w1_ref: (C_in, TH)      fc1 weight slice (compute dtype)
    # b1_ref: (1, TH)         f32
    # w2_ref: (TH, PC_out)    fc2 weight slice (compute dtype)
    # b2_ref: (1, PC_out)     f32
    # o_ref : (TM, PC_out)    output tile (written on last hidden step)
    # acc_ref: (TM, PC_out)   f32 accumulator (VMEM scratch)
    k = pl.program_id(1)

    @pl.when(k == 0)
    def _():
        acc_ref[...] = jnp.zeros_like(acc_ref)

    x = x_ref[...].astype(compute_dtype)

    # fc1 slice on the MXU, f32 accumulation, f32 bias
    h = jnp.dot(x, w1_ref[...], preferred_element_type=jnp.float32)
    h = h + b1_ref[...]

    # GELU in compute dtype (bf16 VPU/EUP on v6e/v7x; tanh variant -> EUP)
    h = jax.nn.gelu(h.astype(compute_dtype), approximate=approximate_gelu)

    # dropout p = 0.0 -> identity
    # TODO(synk): nonzero dropout would need pltpu.prng_seed / stateful_bernoulli.

    # fc2 slice on the MXU, accumulate in f32
    acc_ref[...] += jnp.dot(h, w2_ref[...], preferred_element_type=jnp.float32)

    @pl.when(k == pl.num_programs(1) - 1)
    def _():
        o_ref[...] = (acc_ref[...] + b2_ref[...]).astype(o_ref.dtype)


def _build_mlp_call(tm, th, tokens, c_in, pc_hid, pc_out, out_dtype,
                    approximate_gelu, compute_dtype, vmem_limit, cost):
    kernel = partial(_mlp_kernel, approximate_gelu=approximate_gelu,
                     compute_dtype=compute_dtype)
    grid = (pl.cdiv(tokens, tm), pc_hid // th)
    return pl.pallas_call(
        kernel,
        out_shape=jax.ShapeDtypeStruct((tokens, pc_out), out_dtype),
        grid_spec=pltpu.PrefetchScalarGridSpec(
            num_scalar_prefetch=0,
            grid=grid,
            in_specs=[
                pl.BlockSpec((tm, c_in), lambda i, k: (i, 0)),     # x tile
                pl.BlockSpec((c_in, th), lambda i, k: (0, k)),     # W1 slice
                pl.BlockSpec((1, th), lambda i, k: (0, k)),        # b1 slice
                pl.BlockSpec((th, pc_out), lambda i, k: (k, 0)),   # W2 slice
                pl.BlockSpec((1, pc_out), lambda i, k: (0, 0)),    # b2
            ],
            out_specs=pl.BlockSpec((tm, pc_out), lambda i, k: (i, 0)),
            scratch_shapes=[pltpu.VMEM((tm, pc_out), jnp.float32)],
        ),
        compiler_params=pltpu.CompilerParams(
            dimension_semantics=("parallel", "arbitrary"),
            vmem_limit_bytes=vmem_limit,
        ),
        cost_estimate=cost,
    )


# --------------------------------------------------------------------------
# Parameter preparation (hoisted out of the per-forward path)
# --------------------------------------------------------------------------
def prepare_mlp_params(w1_t, b1, w2_t, b2, compute_dtype=jnp.bfloat16):
    """Pad/cast the Linear weights once.  w1_t/w2_t are already (in, out)."""
    cdt = jnp.dtype(compute_dtype)
    c_in, c_hid = w1_t.shape
    c_hid2, c_out = w2_t.shape
    assert c_hid == c_hid2
    pc_hid = _round_up(c_hid, _LANE)
    pc_out = _round_up(c_out, _LANE)
    return dict(
        w1=_pad2d(jnp.asarray(w1_t, cdt), c_in, pc_hid),
        b1=_pad2d(jnp.asarray(b1, jnp.float32).reshape(1, c_hid), 1, pc_hid),
        w2=_pad2d(jnp.asarray(w2_t, cdt), pc_hid, pc_out),
        b2=_pad2d(jnp.asarray(b2, jnp.float32).reshape(1, c_out), 1, pc_out),
        c_in=c_in, c_hid=c_hid, c_out=c_out,
        pc_hid=pc_hid, pc_out=pc_out, compute_dtype=cdt,
    )


# --------------------------------------------------------------------------
# Forward
# --------------------------------------------------------------------------
def mlp_pallas(x, params, *, token_tile=512, hidden_tile=None,
               approximate_gelu=None):
    """basicsr Mlp forward.  x: (B, N, C_in) -> (B, N, C_out)."""
    B, N, c_in = x.shape
    assert c_in == params["c_in"], "x channel dim does not match weights"
    c_hid, c_out = params["c_hid"], params["c_out"]
    pc_hid, pc_out = params["pc_hid"], params["pc_out"]
    cdt = params["compute_dtype"]
    out_dtype = x.dtype

    if approximate_gelu is None:
        # tanh GELU on the fast (bf16) path, exact erf on the f32 path
        approximate_gelu = (cdt != jnp.dtype(jnp.float32))

    tokens = B * N
    x2d = x.reshape(tokens, c_in)        # no pad / no cast: free reshape only

    xdb = jnp.dtype(x.dtype).itemsize
    odb = jnp.dtype(out_dtype).itemsize
    cdb = cdt.itemsize

    def vmem_bytes(tm_, th_):
        # conservative: every pipelined block counted double-buffered
        blocks = 2 * (tm_ * c_in * xdb            # x tile
                      + c_in * th_ * cdb          # W1 slice
                      + th_ * 4                   # b1 slice
                      + th_ * pc_out * cdb        # W2 slice
                      + pc_out * 4                # b2
                      + tm_ * pc_out * odb)       # out tile (out dtype!)
        scratch = tm_ * pc_out * 4                # f32 accumulator
        interm = tm_ * th_ * (4 + 2 * cdb)        # h (f32) + gelu(h) (compute)
        return blocks + scratch + interm

    cap = _vmem_capacity_bytes()
    budget = _vmem_budget_bytes(cap)

    # token tile: as large as requested, sublane-aligned, never above the data
    tm = min(_round_up(max(token_tile, _ROW), _ROW), _round_up(tokens, _ROW))

    # hidden tile: keep weights fully resident if they fit, otherwise stream
    # slices of the hidden dim (reduction grid axis) — never shrink tm first
    if hidden_tile is not None:
        th = min(_round_up(int(hidden_tile), _LANE), pc_hid)
        if pc_hid % th != 0:
            raise ValueError("hidden_tile must divide the padded hidden dim")
    else:
        candidates = [pc_hid] + [c for c in (2048, 1024, 512, 256, 128)
                                 if c < pc_hid and pc_hid % c == 0]
        th = candidates[-1]
        for cand in candidates:
            if vmem_bytes(tm, cand) <= budget:
                th = cand
                break
    # last resort: shrink the token tile
    while vmem_bytes(tm, th) > budget and tm > _ROW:
        tm = max(_ROW, _round_up(tm // 2, _ROW))

    est = vmem_bytes(tm, th)
    vmem_limit = int(min(max(est + 12 * 1024 * 1024, 32 * 1024 * 1024),
                         cap - 16 * 1024 * 1024))

    n_token_tiles = pl.cdiv(tokens, tm)
    weight_reads = 1 if th == pc_hid else n_token_tiles
    cost = pl.CostEstimate(
        flops=2 * tokens * (c_in * c_hid + c_hid * c_out),
        transcendentals=tokens * c_hid,
        bytes_accessed=int(tokens * c_in * xdb
                           + weight_reads * (c_in * pc_hid + pc_hid * pc_out) * cdb
                           + tokens * pc_out * odb),
    )

    out2d = _build_mlp_call(tm, th, tokens, c_in, pc_hid, pc_out, out_dtype,
                            approximate_gelu, cdt, vmem_limit, cost)(
        x2d, params["w1"], params["b1"], params["w2"], params["b2"])

    return out2d[:, :c_out].reshape(B, N, c_out)


# --------------------------------------------------------------------------
# Init / reference
# --------------------------------------------------------------------------
def init_mlp_params(key, in_features, hidden_features, out_features,
                    dtype=jnp.float32):
    """Deterministic init mimicking nn.Linear default (kaiming-uniform-ish)."""
    k1, k2, k3, k4 = jax.random.split(key, 4)
    bound1 = 1.0 / math.sqrt(in_features)
    bound2 = 1.0 / math.sqrt(hidden_features)
    # stored already transposed: (in, out)
    w1_t = jax.random.uniform(k1, (in_features, hidden_features),
                              minval=-bound1, maxval=bound1, dtype=dtype)
    b1 = jax.random.uniform(k2, (hidden_features,),
                            minval=-bound1, maxval=bound1, dtype=dtype)
    w2_t = jax.random.uniform(k3, (hidden_features, out_features),
                              minval=-bound2, maxval=bound2, dtype=dtype)
    b2 = jax.random.uniform(k4, (out_features,),
                            minval=-bound2, maxval=bound2, dtype=dtype)
    return w1_t, b1, w2_t, b2


def mlp_ref(x, w1_t, b1, w2_t, b2):
    """Pure-JAX reference (matches PyTorch Mlp forward with drop=0)."""
    h = jnp.einsum("bnc,ch->bnh", x, w1_t) + b1
    h = jax.nn.gelu(h, approximate=False)
    return jnp.einsum("bnh,ho->bno", h, w2_t) + b2


if __name__ == "__main__":
    key = jax.random.PRNGKey(0)
    kx, kp = jax.random.split(key)

    B, N = 2, 8                      # batch, sequence length
    in_features = 16
    hidden_features = 32
    out_features = 16

    x = jax.random.normal(kx, (B, N, in_features), dtype=jnp.float32)
    w1_t, b1, w2_t, b2 = init_mlp_params(kp, in_features, hidden_features,
                                         out_features)
    ref = mlp_ref(x, w1_t, b1, w2_t, b2)

    # 1) default perf path: bf16 MXU compute, tanh GELU (EUP), f32 accumulation
    params_bf16 = prepare_mlp_params(w1_t, b1, w2_t, b2,
                                     compute_dtype=jnp.bfloat16)
    out = jax.block_until_ready(mlp_pallas(x, params_bf16))
    assert out.shape == (B, N, out_features)
    assert jnp.allclose(out, ref, atol=1e-1, rtol=1e-1), "bf16 mismatch vs ref"

    # 2) exact path: f32 compute, erf GELU (matches torch nn.GELU())
    params_f32 = prepare_mlp_params(w1_t, b1, w2_t, b2,
                                    compute_dtype=jnp.float32)
    out_f32 = jax.block_until_ready(
        mlp_pallas(x, params_f32, approximate_gelu=False))
    assert out_f32.shape == (B, N, out_features)
    assert jnp.allclose(out_f32, ref, atol=1e-5, rtol=1e-5), "f32 mismatch vs ref"

    # 3) exercise the hidden-dim reduction (streamed-weights) path exactly
    hf2 = 256
    w1b, b1b, w2b, b2b = init_mlp_params(jax.random.PRNGKey(1), in_features,
                                         hf2, out_features)
    ref2 = mlp_ref(x, w1b, b1b, w2b, b2b)
    params2 = prepare_mlp_params(w1b, b1b, w2b, b2b, compute_dtype=jnp.float32)
    out2 = jax.block_until_ready(
        mlp_pallas(x, params2, hidden_tile=128, approximate_gelu=False))
    assert out2.shape == (B, N, out_features)
    assert jnp.allclose(out2, ref2, atol=1e-4, rtol=1e-4), \
        "hidden-tiled mismatch vs ref"

    print("KERNEL_OK")
</pallas_src>

<mosaic_0001>
module attributes {stable_mosaic.version = 11 : i64} {
  func.func @_mlp_kernel(%arg0: i32, %arg1: i32, %arg2: memref<16x16xf32, #tpu.memory_space<vmem>>, %arg3: memref<16x128xbf16, #tpu.memory_space<vmem>>, %arg4: memref<1x128xf32, #tpu.memory_space<vmem>>, %arg5: memref<128x128xbf16, #tpu.memory_space<vmem>>, %arg6: memref<1x128xf32, #tpu.memory_space<vmem>>, %arg7: memref<16x128xf32, #tpu.memory_space<vmem>>, %arg8: memref<16x128xf32, #tpu.memory_space<vmem>>) attributes {dimension_semantics = [#tpu.dimension_semantics<parallel>, #tpu.dimension_semantics<arbitrary>], iteration_bounds = array<i64: 1, 1>, scalar_prefetch = 0 : i64, scratch_operands = 1 : i64, tpu.core_type = #tpu.core_type<tc>, window_params = [{transform_indices = @transform_0, window_bounds = array<i64: 16, 16>}, {transform_indices = @transform_1, window_bounds = array<i64: 16, 128>}, {transform_indices = @transform_2, window_bounds = array<i64: 1, 128>}, {transform_indices = @transform_3, window_bounds = array<i64: 128, 128>}, {pipeline_mode = #tpu.pipeline_mode<synchronous>, transform_indices = @transform_4, window_bounds = array<i64: 1, 128>}, {transform_indices = @transform_5, window_bounds = array<i64: 16, 128>}]} {
    %c0_i32 = arith.constant 0 : i32
    %0 = arith.cmpi eq, %arg1, %c0_i32 : i32
    %1 = arith.extui %0 : i1 to i32
    %c0_i32_0 = arith.constant 0 : i32
    %2 = arith.cmpi ne, %1, %c0_i32_0 : i32
    scf.if %2 {
      %cst_19 = arith.constant 0.000000e+00 : f32
      %32 = vector.broadcast %cst_19 : f32 to vector<16x128xf32>
      %c0_20 = arith.constant 0 : index
      %c0_21 = arith.constant 0 : index
      %33 = vector.load %arg8[%c0_20, %c0_21] : memref<16x128xf32, #tpu.memory_space<vmem>>, vector<16x128xf32>
      tpu.vector_store %arg8[%c0_20, %c0_21], %32 {strides = array<i32>} : memref<16x128xf32, #tpu.memory_space<vmem>>, vector<16x128xf32>,
    } else {
    }
    %c0 = arith.constant 0 : index
    %c0_1 = arith.constant 0 : index
    %3 = vector.load %arg2[%c0, %c0_1] : memref<16x16xf32, #tpu.memory_space<vmem>>, vector<16x16xf32>
    %4 = arith.truncf %3 : vector<16x16xf32> to vector<16x16xbf16>
    %c0_2 = arith.constant 0 : index
    %c0_3 = arith.constant 0 : index
    %5 = vector.load %arg3[%c0_2, %c0_3] : memref<16x128xbf16, #tpu.memory_space<vmem>>, vector<16x128xbf16>
    %cst = arith.constant dense<0.000000e+00> : vector<16x128xf32>
    %6 = tpu.matmul %4, %5, %cst {dimension_numbers = #tpu.dot_dimension_numbers<[1], [0], [0], [1], [0, 0, 1, 1], [], []>} : vector<16x16xbf16>, vector<16x128xbf16>, vector<16x128xf32> -> vector<16x128xf32>
    %c0_4 = arith.constant 0 : index
    %c0_5 = arith.constant 0 : index
    %7 = vector.load %arg4[%c0_4, %c0_5] : memref<1x128xf32, #tpu.memory_space<vmem>>, vector<1x128xf32>
    %8 = vector.broadcast %7 : vector<1x128xf32> to vector<16x128xf32>
    %9 = arith.addf %6, %8 : vector<16x128xf32>
    %10 = arith.truncf %9 : vector<16x128xf32> to vector<16x128xbf16>
    %11 = arith.mulf %10, %10 : vector<16x128xbf16>
    %12 = arith.mulf %10, %11 : vector<16x128xbf16>
    %cst_6 = arith.constant 4.467770e-02 : bf16
    %13 = vector.broadcast %cst_6 : bf16 to vector<16x128xbf16>
    %14 = arith.mulf %13, %12 : vector<16x128xbf16>
    %15 = arith.addf %10, %14 : vector<16x128xbf16>
    %cst_7 = arith.constant 7.968750e-01 : bf16
    %16 = vector.broadcast %cst_7 : bf16 to vector<16x128xbf16>
    %17 = arith.mulf %16, %15 : vector<16x128xbf16>
    %18 = math.tanh %17 : vector<16x128xbf16>
    %cst_8 = arith.constant 1.000000e+00 : bf16
    %19 = vector.broadcast %cst_8 : bf16 to vector<16x128xbf16>
    %20 = arith.addf %19, %18 : vector<16x128xbf16>
    %cst_9 = arith.constant 5.000000e-01 : bf16
    %21 = vector.broadcast %cst_9 : bf16 to vector<16x128xbf16>
    %22 = arith.mulf %21, %20 : vector<16x128xbf16>
    %23 = arith.mulf %10, %22 : vector<16x128xbf16>
    %c0_10 = arith.constant 0 : index
    %c0_11 = arith.constant 0 : index
    %24 = vector.load %arg8[%c0_10, %c0_11] : memref<16x128xf32, #tpu.memory_space<vmem>>, vector<16x128xf32>
    %c0_12 = arith.constant 0 : index
    %c0_13 = arith.constant 0 : index
    %25 = vector.load %arg5[%c0_12, %c0_13] : memref<128x128xbf16, #tpu.memory_space<vmem>>, vector<128x128xbf16>
    %cst_14 = arith.constant dense<0.000000e+00> : vector<16x128xf32>
    %26 = tpu.matmul %23, %25, %cst_14 {dimension_numbers = #tpu.dot_dimension_numbers<[1], [0], [0], [1], [0, 0, 1, 1], [], []>} : vector<16x128xbf16>, vector<128x128xbf16>, vector<16x128xf32> -> vector<16x128xf32>
    %27 = arith.addf %24, %26 : vector<16x128xf32>
    %c0_15 = arith.constant 0 : index
    %c0_16 = arith.constant 0 : index
    %28 = vector.load %arg8[%c0_15, %c0_16] : memref<16x128xf32, #tpu.memory_space<vmem>>, vector<16x128xf32>
    tpu.vector_store %arg8[%c0_15, %c0_16], %27 {strides = array<i32>} : memref<16x128xf32, #tpu.memory_space<vmem>>, vector<16x128xf32>,
    %c0_i32_17 = arith.constant 0 : i32
    %29 = arith.cmpi eq, %arg1, %c0_i32_17 : i32
    %30 = arith.extui %29 : i1 to i32
    %c0_i32_18 = arith.constant 0 : i32
    %31 = arith.cmpi ne, %30, %c0_i32_18 : i32
    scf.if %31 {
      %c0_19 = arith.constant 0 : index
      %c0_20 = arith.constant 0 : index
      %32 = vector.load %arg8[%c0_19, %c0_20] : memref<16x128xf32, #tpu.memory_space<vmem>>, vector<16x128xf32>
      %c0_21 = arith.constant 0 : index
      %c0_22 = arith.constant 0 : index
      %33 = vector.load %arg6[%c0_21, %c0_22] : memref<1x128xf32, #tpu.memory_space<vmem>>, vector<1x128xf32>
      %34 = vector.broadcast %33 : vector<1x128xf32> to vector<16x128xf32>
      %35 = arith.addf %32, %34 : vector<16x128xf32>
      %c0_23 = arith.constant 0 : index
      %c0_24 = arith.constant 0 : index
      %36 = vector.load %arg7[%c0_23, %c0_24] : memref<16x128xf32, #tpu.memory_space<vmem>>, vector<16x128xf32>
      tpu.vector_store %arg7[%c0_23, %c0_24], %35 {strides = array<i32>} : memref<16x128xf32, #tpu.memory_space<vmem>>, vector<16x128xf32>,
    } else {
    }
    return
  }
  func.func @transform_0(%arg0: i32, %arg1: i32) -> (i32, i32) {
    %c0_i32 = arith.constant 0 : i32
    %c0_i32_0 = arith.constant 0 : i32
    return %arg0, %c0_i32 : i32, i32
  }
  func.func @transform_1(%arg0: i32, %arg1: i32) -> (i32, i32) {
    %c0_i32 = arith.constant 0 : i32
    %c0_i32_0 = arith.constant 0 : i32
    return %c0_i32, %arg1 : i32, i32
  }
  func.func @transform_2(%arg0: i32, %arg1: i32) -> (i32, i32) {
    %c0_i32 = arith.constant 0 : i32
    %c0_i32_0 = arith.constant 0 : i32
    return %c0_i32, %arg1 : i32, i32
  }
  func.func @transform_3(%arg0: i32, %arg1: i32) -> (i32, i32) {
    %c0_i32 = arith.constant 0 : i32
    %c0_i32_0 = arith.constant 0 : i32
    return %arg1, %c0_i32 : i32, i32
  }
  func.func @transform_4(%arg0: i32, %arg1: i32) -> (i32, i32) {
    %c0_i32 = arith.constant 0 : i32
    %c0_i32_0 = arith.constant 0 : i32
    %c0_i32_1 = arith.constant 0 : i32
    return %c0_i32, %c0_i32_0 : i32, i32
  }
  func.func @transform_5(%arg0: i32, %arg1: i32) -> (i32, i32) {
    %c0_i32 = arith.constant 0 : i32
    %c0_i32_0 = arith.constant 0 : i32
    return %arg0, %c0_i32 : i32, i32
  }
}

</mosaic_0001>

<bundles_post_ra>
// kernel: tpu_custom_call.1
= control target key start
LH: loop header
LB: loop body
LE: loop exit
PB: predicated region body
PF: predicated region fallthrough
CT: control target
= control target key end

     0   :  { %10 = vsyncpa [#allocation4], 0  ;;  %s561_s0 = inlined_call_operand.hbm [shape: f32[16,16], index: 0, kind: input, shape index: {}]   ;;  %s562_s1 = inlined_call_operand.hbm [shape: bf16[16,128], index: 1, kind: input, shape index: {}]   ;;  %s563_s2 = inlined_call_operand.vmem [shape: f32[1,128], index: 2, kind: input, shape index: {}]   ;;  %s564_s3 = inlined_call_operand.hbm [shape: bf16[128,128], index: 3, kind: input, shape index: {}]   ;;  %s565_s4 = inlined_call_operand.vmem [shape: f32[1,128], index: 4, kind: input, shape index: {}]   ;;  %s566_s5 = inlined_call_operand.hbm [shape: f32[16,128], index: 5, kind: output, shape index: {}]  }
   0x1   :  { %11 = vsyncpa [#allocation7], 0 }
   0x2   :  { %12 = vsyncpa [#allocation5], 0  ;;  %s455_s18 = smov [#allocation6]   ;;  %s361_s22 = scalar_lea.hbm %s562_s1, 128 }
   0x3   :  { %s30_s19 = sshll.u32 %s455_s18, 4  ;;  %p362_p0 = scmp.ne.s32.totalorder %s562_s1, %s361_s22  ;;  %s31_s19 = int_to_ptr.vmem [resolvable:$true] %s30_s19 }
   0x4   :  { %p365_p1 = scmp.lt.u32.totalorder %s361_s22, %s562_s1 }
   0x6   :  { %p367_p2 = pnand %p365_p1, %p362_p0 }
   0x8   :  { %370 = shalt.err (!%p367_p2)
}
   0x9   :  { %s371_s27 = scalar_lea.vmem %s31_s19, 128  ;;  %p376_p4 = scmp.lt.s32.totalorder %s31_s19, %s31_s19 }
   0xa   :  { %p372_p3 = scmp.ne.s32.totalorder %s31_s19, %s371_s27  ;;  %p377_p5 = scmp.lt.s32.totalorder %s371_s27, %s371_s27 }
   0xc   :  { %p378_p6 = por %p377_p5, %p376_p4 }
   0xe   :  { %p379_p7 = pnand %p378_p6, %p372_p3 }
  0x10   :  { %382 = shalt.err (!%p379_p7)
}
  0x11   :  { %s456_s28 = smov 64   ;;  %s457_s29 = smov 4  }
  0x12   :  { %36 = dma.hbm_to_vmem [thread:$0]  %s562_s1, 128, %s31_s19, [#allocation7], %s456_s28, %s456_s28, %s457_s29  }
  0x13   :  { %s458_s7 = smov [#allocation3]   ;;  %s383_s11 = scalar_lea.hbm %s561_s0, 256 }
  0x14   :  { %s18_s8 = sshll.u32 %s458_s7, 4  ;;  %p384_p8 = scmp.ne.s32.totalorder %s561_s0, %s383_s11  ;;  %s19_s8 = int_to_ptr.vmem [resolvable:$true] %s18_s8 }
  0x15   :  { %p387_p9 = scmp.lt.u32.totalorder %s383_s11, %s561_s0 }
  0x17   :  { %p389_p10 = pnand %p387_p9, %p384_p8 }
  0x19   :  { %392 = shalt.err (!%p389_p10)
}
  0x1a   :  { %s393_s16 = scalar_lea.vmem %s19_s8, 256  ;;  %p398_p12 = scmp.lt.s32.totalorder %s19_s8, %s19_s8 }
  0x1b   :  { %p394_p11 = scmp.ne.s32.totalorder %s19_s8, %s393_s16  ;;  %p399_p13 = scmp.lt.s32.totalorder %s393_s16, %s393_s16 }
  0x1d   :  { %p400_p0 = por %p399_p13, %p398_p12 }
  0x1f   :  { %p401_p1 = pnand %p400_p0, %p394_p11 }
  0x21   :  { %404 = shalt.err (!%p401_p1)
}
  0x22   :  { %s459_s1 = smov 128   ;;  %s460_s17 = smov 8  }
  0x23   :  { %24 = dma.hbm_to_vmem [thread:$0]  %s561_s0, 256, %s19_s8, [#allocation4], %s459_s1, %s459_s1, %s460_s17  }
  0x24   :  { %s461_s20 = smov [#allocation8]   ;;  %s405_s24 = scalar_lea.hbm %s564_s3, 1024 }
  0x25   :  { %s44_s21 = sshll.u32 %s461_s20, 4  ;;  %p406_p2 = scmp.ne.s32.totalorder %s564_s3, %s405_s24  ;;  %s45_s21 = int_to_ptr.vmem [resolvable:$true] %s44_s21 }
  0x26   :  { %p409_p3 = scmp.lt.u32.totalorder %s405_s24, %s564_s3 }
  0x28   :  { %p411_p4 = pnand %p409_p3, %p406_p2 }
  0x2a   :  { %414 = shalt.err (!%p411_p4)
}
  0x2b   :  { %s415_s6 = scalar_lea.vmem %s45_s21, 1024  ;;  %p420_p6 = scmp.lt.s32.totalorder %s45_s21, %s45_s21 }
  0x2c   :  { %p416_p5 = scmp.ne.s32.totalorder %s45_s21, %s415_s6  ;;  %p421_p7 = scmp.lt.s32.totalorder %s415_s6, %s415_s6 }
  0x2e   :  { %p422_p8 = por %p421_p7, %p420_p6 }
  0x30   :  { %p423_p9 = pnand %p422_p8, %p416_p5 }
  0x32   :  { %426 = shalt.err (!%p423_p9)
}
  0x33   :  { %50 = dma.hbm_to_vmem [thread:$0]  %s564_s3, 1024, %s45_s21, [#allocation7], %s456_s28, %s456_s28, %s457_s29  }
  0x34   :  { %449 = dma.done.wait [#allocation4], 256  }
  0x35   :  { %450 = vsyncadd [#allocation4], 4294967040 }
  0x36   :  { %451 = dma.done.wait [#allocation7], 1152  }
  0x37   :  { %452 = vsyncadd [#allocation7], 4294966144  ;;  %v462_v0 = vmov 0.0   ;;  %vm463_vm0 = vmmov 0   ;;  %v350_v1 = vld [vmem:[#allocation6] sm:$0xff]   ;;  %v73_v2 = vld [vmem:[#allocation3] sm:$0xff] }
  0x38   :  { %314 = vmatprep.subr.bf16.mxu0 %v462_v0  ;;  %316 = vmatprep.mubr.msk.bf16.mxu0 %vm463_vm0, %v462_v0  ;;  %v74_v3 = vld [vmem:[#allocation3 + $0x8] sm:$0xff]  ;;  %vm91_vm1 = vcmask 130048   ;;  %v351_v5 = vld [vmem:[#allocation8] sm:$0xff]   ;;  %v352_v6 = vld [vmem:[#allocation8 + $0x8] sm:$0xff]   ;;  %s464_s8 = smov [#allocation9]  }
  0x39   :  { %320 = vmatprep.subr.bf16.mxu1 %v462_v0  ;;  %336 = vmatprep.mubr.msk.bf16.mxu1 %vm463_vm0, %v462_v0  ;;  %v75_v4 = vpack.c.bf16 %v74_v3, %v73_v2  ;;  %v353_v7 = vld [vmem:[#allocation8 + $0x10] sm:$0xff]   ;;  %v354_v8 = vld [vmem:[#allocation8 + $0x18] sm:$0xff]   ;;  %v355_v9 = vld [vmem:[#allocation8 + $0x20] sm:$0xff]   ;;  %s278_s9 = sshll.u32 %s464_s8, 4  ;;  %s279_s9 = int_to_ptr.vmem [resolvable:$true] %s278_s9 }
  0x3a   :  { %315 = vmatpush3.bf16.msra.mxu0 %v350_v1  ;;  %321 = vmatpush3.bf16.msra.mxu1 %v351_v5  ;;  %v356_v10 = vld [vmem:[#allocation8 + $0x28] sm:$0xff]   ;;  %v357_v11 = vld [vmem:[#allocation8 + $0x30] sm:$0xff]   ;;  %v358_v12 = vld [vmem:[#allocation8 + $0x38] sm:$0xff]   ;;  %s427_s10 = scalar_lea.vmem %s279_s9, 256  ;;  %p432_p11 = scmp.lt.s32.totalorder %s279_s9, %s279_s9 }
  0x3b   :  { %322 = vmatprep.subr.bf16.mxu1 %v462_v0  ;;  %v291_v13 = vld [vmem:[%s563_s2] ss:$0 sm:$0xff]  ;;  %p428_p10 = scmp.ne.s32.totalorder %s279_s9, %s427_s10  ;;  %p433_p12 = scmp.lt.s32.totalorder %s427_s10, %s427_s10 }
  0x3c   :  { %v302_v30 = vld [vmem:[%s565_s4] ss:$0 sm:$0xff] }
  0x3d   :  { %317 = vmatmul.mubr.msk.bf16.vlgmr.msra.gmra.mrb[0].mxu0 %vm91_vm1, %v75_v4  ;;  %p434_p13 = por %p433_p12, %p432_p11 }
  0x3e   :  { %323 = vmatpush3.bf16.msra.mxu1 %v352_v6 }
  0x3f   :  { %324 = vmatprep.subr.bf16.mxu1 %v462_v0  ;;  %p435_p0 = pnand %p434_p13, %p428_p10 }
  0x42   :  { %325 = vmatpush3.bf16.msra.mxu1 %v353_v7 }
  0x43   :  { %326 = vmatprep.subr.bf16.mxu1 %v462_v0 }
  0x46   :  { %327 = vmatpush3.bf16.msra.mxu1 %v354_v8 }
  0x47   :  { %328 = vmatprep.subr.bf16.mxu1 %v462_v0 }
  0x4a   :  { %329 = vmatpush3.bf16.msra.mxu1 %v355_v9 }
  0x4b   :  { %330 = vmatprep.subr.bf16.mxu1 %v462_v0 }
  0x4e   :  { %331 = vmatpush3.bf16.msra.mxu1 %v356_v10 }
  0x4f   :  { %332 = vmatprep.subr.bf16.mxu1 %v462_v0 }
  0x52   :  { %333 = vmatpush3.bf16.msra.mxu1 %v357_v11 }
  0x53   :  { %334 = vmatprep.subr.bf16.mxu1 %v462_v0 }
  0x56   :  { %335 = vmatpush3.bf16.msra.mxu1 %v358_v12 }
 0x110   :  { %v129_v14 = vpop.f32.mrb[0].mxu0 }
 0x111   :  { %v318_v15 = vpop.f32.mrb[1].mxu0  ;;  %v130_v17 = vadd.f32 %v291_v13, %v129_v14 }
 0x112   :  { %v132_v16 = vpop.f32.mrb[2].mxu0 }
 0x113   :  { %v133_v18 = vadd.f32 %v291_v13, %v132_v16  ;;  %v319_v19 = vpop.f32.mrb[3].mxu0 }
 0x115   :  { %v136_v20 = vpack.c.bf16 %v133_v18, %v130_v17 }
 0x117   :  { %v137_v21 = vmul.bf16 %v136_v20, %v136_v20 }
 0x119   :  { %v138_v22 = vmul.bf16 %v137_v21, %v136_v20 }
 0x11b   :  { %v139_v23 = vmul.bf16 1027030327, %v138_v22 }
 0x11d   :  { %v140_v24 = vadd.bf16 %v139_v23, %v136_v20 }
 0x11f   :  { %v141_v25 = vmul.bf16 1061961548, %v140_v24 }
 0x121   :  { %359 = vtanh.bf16 %v141_v25 }
 0x12c   :  { %v360_v26 = vpop.eup %359 }
 0x12d   :  { %v143_v27 = vadd.bf16 1065369472, %v360_v26 }
 0x12f   :  { %v144_v28 = vmul.bf16 1056980736, %v143_v27 }
 0x131   :  { %v145_v29 = vmul.bf16 %v144_v28, %v136_v20 }
 0x133   :  { %337 = vmatmul.mubr.bf16.vlgmr.msra.gmra.mrb[0].mxu1 %v145_v29 }
 0x206   :  { %v246_v31 = vpop.f32.mrb[0].mxu1 }
 0x207   :  { %v269_v32 = vadd.f32 %v302_v30, %v246_v31  ;;  %v338_v33 = vpop.f32.mrb[1].mxu1 }
 0x208   :  { %v249_v34 = vpop.f32.mrb[2].mxu1 }
 0x209   :  { %271 = vst [vmem:[#allocation9] sm:$0xff] %v269_v32  ;;  %v270_v35 = vadd.f32 %v302_v30, %v249_v34  ;;  %v339_v36 = vpop.f32.mrb[3].mxu1 }
 0x20b   :  { %272 = vst [vmem:[#allocation9 + $0x8] sm:$0xff] %v270_v35 }
 0x20c   :  { %438 = shalt.err (!%p435_p0)
}
 0x20d   :  { %s439_s12 = scalar_lea.hbm %s566_s5, 256 }
 0x20e   :  { %p440_p1 = scmp.ne.s32.totalorder %s566_s5, %s439_s12  ;;  %p443_p2 = scmp.lt.u32.totalorder %s439_s12, %s566_s5 }
 0x210   :  { %p445_p3 = pnand %p443_p2, %p440_p1 }
 0x212   :  { %448 = shalt.err (!%p445_p3)
}
 0x213   :  { %284 = dma.vmem_to_hbm [thread:$0]  %s279_s9, 256, %s566_s5, [#allocation5], %s459_s1, %s459_s1, %s460_s17  }
 0x214   :  { %453 = dma.done.wait [#allocation5], 256  }
 0x215   :  { %454 = vsyncadd [#allocation5], 4294967040 }
 0x216   :  { %288 = vsyncpa [#allocation4], 1 }
 0x217   :  { %289 = vsyncpa [#allocation7], 1 }
 0x218   :  { %290 = vsyncpa [#allocation5], 1 }

</bundles_post_ra>
